<compile_context>
chip_gen: v7x
topology: tpu7x:2x2x1
jax: 0.10.0
libtpu: 0.0.40
codegen_flags: <defaults>
</compile_context>

<pallas_src>
import math

import jax
import jax.numpy as jnp
from jax.experimental import pallas as pl
from jax.experimental.pallas import tpu as pltpu

# Laplace wavelet constants (identical to the PyTorch reference).
_A = 0.08
_EP = 0.03
_TAL = 0.1
_W = 2.0 * math.pi * 50.0
_Q = 1.0 - _EP * _EP

_HALO = 128  # lanes of cross-tile halo (must be >= K-1)


def _laplace_filter_bank(out_channels, K):
    """(C, K) Laplace wavelet filter bank, plain jnp (fuses with input prep)."""
    a_ = jnp.linspace(1.0, 10.0, out_channels, dtype=jnp.float32).reshape(-1, 1)
    b_ = jnp.linspace(0.0, 10.0, out_channels, dtype=jnp.float32).reshape(-1, 1)
    t = jnp.linspace(0.0, 1.0, K, dtype=jnp.float32).reshape(1, -1)
    p = (t - b_) / (a_ + 1e-8)
    arg = _W * (p - _TAL)
    return (_A * jnp.exp((-_EP / math.sqrt(_Q)) * arg)) * (-jnp.sin(arg))


def _laplace_conv_kernel(f2_ref, xc_ref, xh_ref, out_ref):
    """One (batch-block, L_out-tile) grid step of conv1d (in_channels=1, stride=1).

    f2_ref : (Nb*C, K*Nb) block-diagonal filter matrix (VMEM resident)
    xc_ref : (Nb, Lt)     current input tile (Nb padded-signal rows)
    xh_ref : (Nb, 128)    halo: first 128 lanes of the next tile
    out_ref: (Nb, C, Lt)  output tile
    """
    Nb, Lt = xc_ref.shape
    n_rows, k_cols = f2_ref.shape
    C = n_rows // Nb
    K = k_cols // Nb

    # Lane-aligned window (Nb, Lt + 128) covering this tile plus its halo.
    win = jnp.concatenate([xc_ref[...], xh_ref[...]], axis=1)

    # Patch matrix: row k*Nb + b == win[b, k : k + Lt].  Each shifted slice is
    # a full (Nb, Lt) slab, so the concat stacks whole sublane tiles instead
    # of gathering single rows.
    patches = jnp.concatenate([win[:, k:k + Lt] for k in range(K)], axis=0)

    # Single MXU matmul per grid step:
    #   out_flat[b*C + c, l] = sum_k filt[c, k] * win[b, l + k]
    acc = jnp.dot(f2_ref[...], patches, preferred_element_type=jnp.float32)
    out_ref[...] = acc.reshape(Nb, C, Lt)


def laplace_fast_forward(waveforms, out_channels, kernel_size, *,
                         max_tile=1024, batch_block=8):
    """Forward pass of Laplace_fast.  waveforms: (N, 1, L) -> (N, C, L_out) f32."""
    # PyTorch __init__ kernel-size adjustment.
    K = kernel_size - 1
    if kernel_size % 2 == 0:
        K += 1

    N, cin, L = waveforms.shape
    assert cin == 1, "Laplace_fast only supports in_channels == 1"
    assert K - 1 <= _HALO, "kernel taps must fit inside one 128-lane halo block"
    assert max_tile % 128 == 0 and max_tile >= 128
    C = out_channels

    # F.conv1d(..., stride=1, padding=1) geometry.
    L_out = (L + 2) - K + 1
    assert L_out >= 1, "kernel longer than padded signal"

    # Lane-dense L_out tile: multiple of 128, never larger than L_out (so the
    # last tile is at most a *partial* block -> masked stores, no slice copy),
    # except for the tiny L_out < 128 case where we pad to one 128-lane tile.
    if L_out >= 128:
        Lt = min(max_tile, (L_out // 128) * 128)
        out_L = L_out
    else:
        Lt = 128
        out_L = 128
    Nb = min(batch_block, N)          # batch rows per grid step
    num_tiles = pl.cdiv(L_out, Lt)
    grid_n = pl.cdiv(N, Nb)
    N_pad = grid_n * Nb               # input batch padded so reads stay in bounds

    # Block-diagonal filter matrix so one matmul covers all Nb rows:
    #   F2[b*C + c, k*Nb + b'] = filt[c, k] * (b == b')
    filt = _laplace_filter_bank(C, K)
    F2 = jnp.einsum("ck,bd->bckd", filt,
                    jnp.eye(Nb, dtype=jnp.float32)).reshape(Nb * C, K * Nb)

    # Padded signal: 1 leading zero (conv padding=1), zeros on the right up to
    # num_tiles*Lt + 128 (covers conv padding, tile padding and halo reads);
    # batch padded to a multiple of Nb.
    W_in = num_tiles * Lt + _HALO
    x2 = waveforms[:, 0, :].astype(jnp.float32)
    xpad = jnp.pad(x2, ((0, N_pad - N), (1, W_in - 1 - L)))

    lane_blocks = Lt // _HALO         # halo block-index stride along the lane axis

    out = pl.pallas_call(
        _laplace_conv_kernel,
        out_shape=jax.ShapeDtypeStruct((N, C, out_L), jnp.float32),
        grid=(grid_n, num_tiles),
        in_specs=[
            # Filter matrix: constant index_map -> fetched once, VMEM resident.
            pl.BlockSpec((Nb * C, K * Nb), lambda i, j: (0, 0)),
            # Current (Nb, Lt) input tile.
            pl.BlockSpec((Nb, Lt), lambda i, j: (i, j)),
            # 128-lane halo at the start of the next tile (element offset (j+1)*Lt).
            pl.BlockSpec((Nb, _HALO), lambda i, j: (i, (j + 1) * lane_blocks)),
        ],
        out_specs=pl.BlockSpec((Nb, C, Lt), lambda i, j: (i, 0, j)),
        compiler_params=pltpu.CompilerParams(
            dimension_semantics=("parallel", "parallel"),
            # ~2-3 MiB per step at Nb=8, Lt=1024, C=8 (double-buffered inputs +
            # output + matmul temporaries): safe on v5e/v6e (128 MiB VMEM) and
            # v7x (64 MiB physical / 32 MiB scoped).
            vmem_limit_bytes=32 * 1024 * 1024,
        ),
    )(F2, xpad, xpad)

    if out_L != L_out:                # only the tiny L_out < 128 case
        out = out[:, :, :L_out]
    return out


def _reference_forward(waveforms, out_channels, kernel_size):
    """Plain-JAX reference (mirrors the PyTorch module) for validation."""
    K = kernel_size - 1
    if kernel_size % 2 == 0:
        K += 1
    filt = _laplace_filter_bank(out_channels, K)
    filters = filt.reshape(out_channels, 1, K)
    return jax.lax.conv_general_dilated(
        waveforms.astype(jnp.float32), filters,
        window_strides=(1,), padding=[(1, 1)],
        dimension_numbers=("NCH", "OIH", "NCH"))


if __name__ == "__main__":
    key = jax.random.PRNGKey(0)
    out_channels, kernel_size = 8, 16     # K -> 16 after the even-size adjustment
    k1, k2 = jax.random.split(key)

    fwd = jax.jit(laplace_fast_forward, static_argnums=(1, 2))

    # Case 1: tiny single-tile output (L_out = 51 < 128), batch < batch block.
    wf_small = jax.random.normal(k1, (2, 1, 64), dtype=jnp.float32)
    out_s = jax.block_until_ready(fwd(wf_small, out_channels, kernel_size))
    ref_s = jax.block_until_ready(_reference_forward(wf_small, out_channels, kernel_size))
    assert out_s.shape == ref_s.shape, (out_s.shape, ref_s.shape)
    tol_s = 2e-3 * float(jnp.max(jnp.abs(ref_s))) + 1e-5
    err_s = float(jnp.max(jnp.abs(out_s - ref_s)))
    assert bool(jnp.allclose(out_s, ref_s, rtol=2e-3, atol=tol_s)), (
        "small: max abs err = %e" % err_s)

    # Case 2: two batch blocks (second partial: N=10, Nb=8) and two L_out tiles
    # (second partial), exercising the cross-tile K-1 halo and masked stores.
    wf_big = jax.random.normal(k2, (10, 1, 1200), dtype=jnp.float32)
    out_b = jax.block_until_ready(fwd(wf_big, out_channels, kernel_size))
    ref_b = jax.block_until_ready(_reference_forward(wf_big, out_channels, kernel_size))
    assert out_b.shape == ref_b.shape, (out_b.shape, ref_b.shape)
    tol_b = 2e-3 * float(jnp.max(jnp.abs(ref_b))) + 1e-5
    err_b = float(jnp.max(jnp.abs(out_b - ref_b)))
    assert bool(jnp.allclose(out_b, ref_b, rtol=2e-3, atol=tol_b)), (
        "big: max abs err = %e" % err_b)

    print("KERNEL_OK")
</pallas_src>

<mosaic_0001>
module attributes {stable_mosaic.version = 11 : i64} {
  func.func @_laplace_conv_kernel(%arg0: i32, %arg1: i32, %arg2: memref<16x32xf32, #tpu.memory_space<vmem>>, %arg3: memref<2x128xf32, #tpu.memory_space<vmem>>, %arg4: memref<2x128xf32, #tpu.memory_space<vmem>>, %arg5: memref<2x8x128xf32, #tpu.memory_space<vmem>>) attributes {dimension_semantics = [#tpu.dimension_semantics<parallel>, #tpu.dimension_semantics<parallel>], iteration_bounds = array<i64: 1, 1>, scalar_prefetch = 0 : i64, scratch_operands = 0 : i64, tpu.core_type = #tpu.core_type<tc>, window_params = [{pipeline_mode = #tpu.pipeline_mode<synchronous>, transform_indices = @transform_0, window_bounds = array<i64: 16, 32>}, {transform_indices = @transform_1, window_bounds = array<i64: 2, 128>}, {transform_indices = @transform_2, window_bounds = array<i64: 2, 128>}, {transform_indices = @transform_3, window_bounds = array<i64: 2, 8, 128>}]} {
    %c0 = arith.constant 0 : index
    %c0_0 = arith.constant 0 : index
    %0 = vector.load %arg3[%c0, %c0_0] : memref<2x128xf32, #tpu.memory_space<vmem>>, vector<2x128xf32>
    %c0_1 = arith.constant 0 : index
    %c0_2 = arith.constant 0 : index
    %1 = vector.load %arg4[%c0_1, %c0_2] : memref<2x128xf32, #tpu.memory_space<vmem>>, vector<2x128xf32>
    %2 = tpu.concatenate %0, %1 in 1 : vector<2x128xf32>, vector<2x128xf32> -> vector<2x256xf32>
    %3 = vector.extract_strided_slice %2 {offsets = [0, 0], sizes = [2, 128], strides = [1, 1]} : vector<2x256xf32> to vector<2x128xf32>
    %4 = vector.extract_strided_slice %2 {offsets = [0, 1], sizes = [2, 128], strides = [1, 1]} : vector<2x256xf32> to vector<2x128xf32>
    %5 = vector.extract_strided_slice %2 {offsets = [0, 2], sizes = [2, 128], strides = [1, 1]} : vector<2x256xf32> to vector<2x128xf32>
    %6 = vector.extract_strided_slice %2 {offsets = [0, 3], sizes = [2, 128], strides = [1, 1]} : vector<2x256xf32> to vector<2x128xf32>
    %7 = vector.extract_strided_slice %2 {offsets = [0, 4], sizes = [2, 128], strides = [1, 1]} : vector<2x256xf32> to vector<2x128xf32>
    %8 = vector.extract_strided_slice %2 {offsets = [0, 5], sizes = [2, 128], strides = [1, 1]} : vector<2x256xf32> to vector<2x128xf32>
    %9 = vector.extract_strided_slice %2 {offsets = [0, 6], sizes = [2, 128], strides = [1, 1]} : vector<2x256xf32> to vector<2x128xf32>
    %10 = vector.extract_strided_slice %2 {offsets = [0, 7], sizes = [2, 128], strides = [1, 1]} : vector<2x256xf32> to vector<2x128xf32>
    %11 = vector.extract_strided_slice %2 {offsets = [0, 8], sizes = [2, 128], strides = [1, 1]} : vector<2x256xf32> to vector<2x128xf32>
    %12 = vector.extract_strided_slice %2 {offsets = [0, 9], sizes = [2, 128], strides = [1, 1]} : vector<2x256xf32> to vector<2x128xf32>
    %13 = vector.extract_strided_slice %2 {offsets = [0, 10], sizes = [2, 128], strides = [1, 1]} : vector<2x256xf32> to vector<2x128xf32>
    %14 = vector.extract_strided_slice %2 {offsets = [0, 11], sizes = [2, 128], strides = [1, 1]} : vector<2x256xf32> to vector<2x128xf32>
    %15 = vector.extract_strided_slice %2 {offsets = [0, 12], sizes = [2, 128], strides = [1, 1]} : vector<2x256xf32> to vector<2x128xf32>
    %16 = vector.extract_strided_slice %2 {offsets = [0, 13], sizes = [2, 128], strides = [1, 1]} : vector<2x256xf32> to vector<2x128xf32>
    %17 = vector.extract_strided_slice %2 {offsets = [0, 14], sizes = [2, 128], strides = [1, 1]} : vector<2x256xf32> to vector<2x128xf32>
    %18 = vector.extract_strided_slice %2 {offsets = [0, 15], sizes = [2, 128], strides = [1, 1]} : vector<2x256xf32> to vector<2x128xf32>
    %19 = tpu.concatenate %3, %4, %5, %6, %7, %8, %9, %10, %11, %12, %13, %14, %15, %16, %17, %18 in 0 : vector<2x128xf32>, vector<2x128xf32>, vector<2x128xf32>, vector<2x128xf32>, vector<2x128xf32>, vector<2x128xf32>, vector<2x128xf32>, vector<2x128xf32>, vector<2x128xf32>, vector<2x128xf32>, vector<2x128xf32>, vector<2x128xf32>, vector<2x128xf32>, vector<2x128xf32>, vector<2x128xf32>, vector<2x128xf32> -> vector<32x128xf32>
    %c0_3 = arith.constant 0 : index
    %c0_4 = arith.constant 0 : index
    %20 = vector.load %arg2[%c0_3, %c0_4] : memref<16x32xf32, #tpu.memory_space<vmem>>, vector<16x32xf32>
    %cst = arith.constant dense<0.000000e+00> : vector<16x128xf32>
    %21 = tpu.matmul %20, %19, %cst {dimension_numbers = #tpu.dot_dimension_numbers<[1], [0], [0], [1], [0, 0, 1, 1], [], []>} : vector<16x32xf32>, vector<32x128xf32>, vector<16x128xf32> -> vector<16x128xf32>
    %22 = vector.shape_cast %21 : vector<16x128xf32> to vector<2x8x128xf32>
    %c0_5 = arith.constant 0 : index
    %c0_6 = arith.constant 0 : index
    %c0_7 = arith.constant 0 : index
    %23 = vector.load %arg5[%c0_5, %c0_6, %c0_7] : memref<2x8x128xf32, #tpu.memory_space<vmem>>, vector<2x8x128xf32>
    tpu.vector_store %arg5[%c0_5, %c0_6, %c0_7], %22 {strides = array<i32>} : memref<2x8x128xf32, #tpu.memory_space<vmem>>, vector<2x8x128xf32>,
    return
  }
  func.func @transform_0(%arg0: i32, %arg1: i32) -> (i32, i32) {
    %c0_i32 = arith.constant 0 : i32
    %c0_i32_0 = arith.constant 0 : i32
    %c0_i32_1 = arith.constant 0 : i32
    return %c0_i32, %c0_i32_0 : i32, i32
  }
  func.func @transform_1(%arg0: i32, %arg1: i32) -> (i32, i32) {
    %c0_i32 = arith.constant 0 : i32
    return %arg0, %arg1 : i32, i32
  }
  func.func @transform_2(%arg0: i32, %arg1: i32) -> (i32, i32) {
    %c1_i32 = arith.constant 1 : i32
    %0 = arith.addi %arg1, %c1_i32 : i32
    %c1_i32_0 = arith.constant 1 : i32
    %1 = arith.muli %0, %c1_i32_0 : i32
    %c0_i32 = arith.constant 0 : i32
    return %arg0, %1 : i32, i32
  }
  func.func @transform_3(%arg0: i32, %arg1: i32) -> (i32, i32, i32) {
    %c0_i32 = arith.constant 0 : i32
    %c0_i32_0 = arith.constant 0 : i32
    return %arg0, %c0_i32, %arg1 : i32, i32, i32
  }
}

</mosaic_0001>

<bundles_post_ra>
// kernel: laplace_fast_forward.1
= control target key start
LH: loop header
LB: loop body
LE: loop exit
PB: predicated region body
PF: predicated region fallthrough
CT: control target
= control target key end

     0   :  { %s504_s0 = inlined_call_operand.vmem [shape: f32[16,32], index: 0, kind: input, shape index: {}]   ;;  %s505_s1 = inlined_call_operand.vmem [shape: f32[2,256], index: 1, kind: input, shape index: {}, may-alias: {1,2}]   ;;  %s506_s2 = inlined_call_operand.vmem [shape: f32[2,256], index: 2, kind: input, shape index: {}, may-alias: {1,2}]   ;;  %s507_s3 = inlined_call_operand.hbm [shape: f32[2,8,128], index: 3, kind: output, shape index: {}]  }
   0x1   :  { %v456_v0 = vld [vmem:[%s505_s1] sm:$0x3]  ;;  %v270_v1 = vld [vmem:[%s506_s2 + $0x2] sm:$0x3] }
   0x2   :  { %v36_v2 = vrot.slane %v456_v0, 6  ;;  %v37_v3 = vrot.slane %v270_v1, 6  ;;  %v45_v4 = vrot.slane %v456_v0, 4  ;;  %v46_v5 = vrot.slane %v270_v1, 4 }
   0x3   :  { %8 = vsyncpa [#allocation3], 0  ;;  %s415_s16 = smov 123   ;;  %s416_s17 = smov 127   ;;  %v321_v8 = vpack.i.bf16 %v270_v1, %v456_v0  ;;  %v54_v9 = vrot.slane %v456_v0, 2  ;;  %v55_v10 = vrot.slane %v270_v1, 2 }
   0x4   :  { %v326_v6 = vpack.i.bf16 %v37_v3, %v36_v2  ;;  %v331_v7 = vpack.i.bf16 %v46_v5, %v45_v4  ;;  %s417_s1 = smov 126   ;;  %s418_s2 = smov 124   ;;  %v162_v12 = vld [vmem:[%s504_s0] sm:$0xff]  ;;  %vm164_vm0 = vcmask 261120   ;;  %vm74_vm1 = vcmask 1006592  }
   0x5   :  { %v341_v11 = vpack.i.bf16 %v55_v10, %v54_v9  ;;  %s419_s18 = smov 125   ;;  %s420_s19 = smov 122   ;;  %287 = vmatprep.mubr.msk.f32.mxu0 %vm164_vm0, %v162_v12  ;;  %vm42_vm2 = vcmask 1039360   ;;  %vm67_vm3 = vcmask 1014784   ;;  %vm81_vm4 = vcmask 998400  }
   0x6   :  { %327 = vrot.lane.b32.xlu1 %v326_v6, %s415_s16  ;;  %317 = vrot.lane.b32.xlu0 %v326_v6, %s416_s17  ;;  %s421_s20 = smov 120   ;;  %s422_s21 = smov 121   ;;  %vm51_vm5 = vcmask 1031168   ;;  %vm60_vm6 = vcmask 1022976   ;;  %vm147_vm7 = vcmask 1041408   ;;  %vm88_vm8 = vcmask 990208  }
   0x7   :  { %s423_s22 = smov 116   ;;  %s424_s23 = smov 119   ;;  %vm149_vm9 = vcmask 1043456   ;;  %vm151_vm10 = vcmask 1045504   ;;  %vm95_vm11 = vcmask 982016   ;;  %vm123_vm12 = vcmask 949248  }
   0x8   :  { %s425_s24 = smov 118   ;;  %s426_s25 = smov 115   ;;  %vm102_vm13 = vcmask 973824   ;;  %vm109_vm14 = vcmask 965632   ;;  %vm130_vm15 = vcmask 941056  }
   0x9   :  { %s427_s28 = smov 117   ;;  %s428_s29 = smov 114  }
   0xa   :  { %332 = vrot.lane.b32.xlu1 %v331_v7, %s417_s1  ;;  %322 = vrot.lane.b32.xlu0 %v321_v8, %s418_s2  ;;  %s429_s30 = smov 113   ;;  %s430_s6 = smov [#allocation2]  }
   0xb   :  { %s253_s7 = sshll.u32 %s430_s6, 4  ;;  %s254_s7 = int_to_ptr.vmem [resolvable:$true] %s253_s7 }
   0xc   :  { %s391_s8 = scalar_lea.vmem %s254_s7, 256  ;;  %p396_p1 = scmp.lt.s32.totalorder %s254_s7, %s254_s7 }
   0xd   :  { %p392_p0 = scmp.ne.s32.totalorder %s254_s7, %s391_s8  ;;  %p397_p2 = scmp.lt.s32.totalorder %s391_s8, %s391_s8 }
   0xe   :  { %342 = vrot.lane.b32.xlu1 %v341_v11, %s419_s18  ;;  %337 = vrot.lane.b32.xlu0 %v331_v7, %s420_s19 }
   0xf   :  { %p398_p3 = por %p397_p2, %p396_p1 }
  0x11   :  { %p399_p4 = pnand %p398_p3, %p392_p0 }
  0x12   :  { %352 = vrot.lane.b32.xlu1 %v321_v8, %s421_s20  ;;  %347 = vrot.lane.b32.xlu0 %v341_v11, %s422_s21 }
  0x16   :  { %362 = vrot.lane.b32.xlu1 %v321_v8, %s423_s22  ;;  %357 = vrot.lane.b32.xlu0 %v326_v6, %s424_s23 }
  0x1a   :  { %372 = vrot.lane.b32.xlu1 %v331_v7, %s425_s24  ;;  %367 = vrot.lane.b32.xlu0 %v326_v6, %s426_s25 }
  0x1e   :  { %382 = vrot.lane.b32.xlu1 %v341_v11, %s427_s28  ;;  %377 = vrot.lane.b32.xlu0 %v331_v7, %s428_s29 }
  0x22   :  { %387 = vrot.lane.b32.xlu0 %v341_v11, %s429_s30 }
  0x78   :  { %v328_v13 = vpop.permute.xlu1 %327  ;;  %v318_v14 = vpop.permute.xlu0 %317 }
  0x79   :  { %v330_v17 = vunpack.i.h.bf16 %v328_v13  ;;  %v329_v18 = vunpack.i.l.bf16 %v328_v13  ;;  %v320_v21 = vunpack.i.h.bf16 %v318_v14  ;;  %v319_v22 = vunpack.i.l.bf16 %v318_v14 }
  0x7b   :  { %v75_v31 = vsel %vm74_vm1, %v329_v18, %v330_v17  ;;  %v43_v33 = vsel %vm42_vm2, %v319_v22, %v320_v21  ;;  %vm137_vm1 = vcmask 932864   ;;  %vm116_vm2 = vcmask 957440  }
  0x7c   :  { %v333_v15 = vpop.permute.xlu1 %332  ;;  %v323_v16 = vpop.permute.xlu0 %322  ;;  %v148_v43 = vsel %vm147_vm7, %v456_v0, %v43_v33 }
  0x7d   :  { %v325_v19 = vunpack.i.h.bf16 %v323_v16  ;;  %v324_v20 = vunpack.i.l.bf16 %v323_v16  ;;  %v335_v25 = vunpack.i.h.bf16 %v333_v15  ;;  %v334_v26 = vunpack.i.l.bf16 %v333_v15 }
  0x7f   :  { %v68_v32 = vsel %vm67_vm3, %v324_v20, %v325_v19  ;;  %v52_v37 = vsel %vm51_vm5, %v334_v26, %v335_v25  ;;  %vm144_vm3 = vcmask 924672  }
  0x80   :  { %v343_v23 = vpop.permute.xlu1 %342  ;;  %v338_v24 = vpop.permute.xlu0 %337  ;;  %v153_v41 = vsel %vm147_vm7, %v68_v32, %v75_v31  ;;  %v150_v47 = vsel %vm149_vm9, %v148_v43, %v52_v37 }
  0x81   :  { %v340_v27 = vunpack.i.h.bf16 %v338_v24  ;;  %v339_v28 = vunpack.i.l.bf16 %v338_v24  ;;  %v345_v29 = vunpack.i.h.bf16 %v343_v23  ;;  %v344_v30 = vunpack.i.l.bf16 %v343_v23  ;;  %v163_v23 = vld [vmem:[%s504_s0 + $0x8] sm:$0xff] }
  0x83   :  { %v82_v34 = vsel %vm81_vm4, %v339_v28, %v340_v27  ;;  %v61_v40 = vsel %vm60_vm6, %v344_v30, %v345_v29 }
  0x84   :  { %v353_v35 = vpop.permute.xlu1 %352  ;;  %v348_v36 = vpop.permute.xlu0 %347  ;;  %v154_v44 = vsel %vm149_vm9, %v153_v41, %v82_v34  ;;  %v152_v49 = vsel %vm151_vm10, %v150_v47, %v61_v40 }
  0x85   :  { %v350_v38 = vunpack.i.h.bf16 %v348_v36  ;;  %v349_v39 = vunpack.i.l.bf16 %v348_v36  ;;  %v355_v53 = vunpack.i.h.bf16 %v353_v35  ;;  %v354_v54 = vunpack.i.l.bf16 %v353_v35 }
  0x87   :  { %v89_v42 = vsel %vm88_vm8, %v349_v39, %v350_v38  ;;  %v96_v5 = vsel %vm95_vm11, %v354_v54, %v355_v53 }
  0x88   :  { %v363_v45 = vpop.permute.xlu1 %362  ;;  %v358_v46 = vpop.permute.xlu0 %357  ;;  %v155_v48 = vsel %vm151_vm10, %v154_v44, %v89_v42 }
  0x89   :  { %v290_v50 = vpack.c.bf16 %v155_v48, %v152_v49  ;;  %v365_v55 = vunpack.i.h.bf16 %v363_v45  ;;  %v364_v56 = vunpack.i.l.bf16 %v363_v45  ;;  %v360_v57 = vunpack.i.h.bf16 %v358_v46 }
  0x8a   :  { %v359_v58 = vunpack.i.l.bf16 %v358_v46 }
  0x8b   :  { %291 = vmatprep.subr.bf16.mxu0 %v290_v50  ;;  %v124_v6 = vsel %vm123_vm12, %v364_v56, %v365_v55 }
  0x8c   :  { %v373_v51 = vpop.permute.xlu1 %372  ;;  %v368_v52 = vpop.permute.xlu0 %367  ;;  %293 = vmatpush3.bf16.msra.mxu0 %v290_v50  ;;  %v103_v7 = vsel %vm102_vm13, %v359_v58, %v360_v57 }
  0x8d   :  { %v370_v59 = vunpack.i.h.bf16 %v368_v52  ;;  %v369_v60 = vunpack.i.l.bf16 %v368_v52  ;;  %v375_v61 = vunpack.i.h.bf16 %v373_v51  ;;  %v374_v62 = vunpack.i.l.bf16 %v373_v51 }
  0x8e   :  { %v156_v15 = vsel %vm147_vm7, %v96_v5, %v103_v7 }
  0x8f   :  { %v131_v8 = vsel %vm130_vm15, %v369_v60, %v370_v59  ;;  %v110_v9 = vsel %vm109_vm14, %v374_v62, %v375_v61 }
  0x90   :  { %v383_v63 = vpop.permute.xlu1 %382  ;;  %v378_v0 = vpop.permute.xlu0 %377  ;;  %v159_v16 = vsel %vm147_vm7, %v124_v6, %v131_v8  ;;  %v157_v18 = vsel %vm149_vm9, %v156_v15, %v110_v9 }
  0x91   :  { %v385_v1 = vunpack.i.h.bf16 %v383_v63  ;;  %v384_v2 = vunpack.i.l.bf16 %v383_v63  ;;  %v380_v3 = vunpack.i.h.bf16 %v378_v0  ;;  %v379_v4 = vunpack.i.l.bf16 %v378_v0 }
  0x93   :  { %v138_v10 = vsel %vm137_vm1, %v379_v4, %v380_v3  ;;  %v117_v12 = vsel %vm116_vm2, %v384_v2, %v385_v1 }
  0x94   :  { %v388_v11 = vpop.permute.xlu0 %387  ;;  %v160_v19 = vsel %vm149_vm9, %v159_v16, %v138_v10  ;;  %v158_v20 = vsel %vm151_vm10, %v157_v18, %v117_v12 }
  0x95   :  { %v390_v13 = vunpack.i.h.bf16 %v388_v11  ;;  %v389_v14 = vunpack.i.l.bf16 %v388_v11 }
  0x97   :  { %v145_v17 = vsel %vm144_vm3, %v389_v14, %v390_v13 }
  0x98   :  { %v161_v21 = vsel %vm151_vm10, %v160_v19, %v145_v17 }
  0x99   :  { %v294_v22 = vpack.c.bf16 %v161_v21, %v158_v20 }
  0x9b   :  { %295 = vmatprep.subr.bf16.mxu0 %v294_v22 }
  0x9c   :  { %297 = vmatpush3.bf16.msra.mxu0 %v294_v22 }
  0x9f   :  { %288 = vmatmul.mubr.msk.f32.vlgmr.msra.gmra.mrb[0].mxu0 %vm164_vm0, %v163_v23 }
 0x172   :  { %v289_v24 = vpop.f32.mrb[0].mxu0 }
 0x173   :  { %247 = vst [vmem:[#allocation2 + $0x8] sm:$0xff] %v289_v24  ;;  %v237_v25 = vpop.f32.mrb[1].mxu0 }
 0x174   :  { %246 = vst [vmem:[#allocation2] sm:$0xff] %v237_v25 }
 0x175   :  { %402 = shalt.err (!%p399_p4)
}
 0x176   :  { %s403_s0 = scalar_lea.hbm %s507_s3, 256 }
 0x177   :  { %p404_p5 = scmp.ne.s32.totalorder %s507_s3, %s403_s0  ;;  %p407_p6 = scmp.lt.u32.totalorder %s403_s0, %s507_s3 }
 0x179   :  { %p409_p7 = pnand %p407_p6, %p404_p5 }
 0x17b   :  { %412 = shalt.err (!%p409_p7)
}
 0x17c   :  { %s431_s15 = smov 128   ;;  %s432_s16 = smov 8  }
 0x17d   :  { %259 = dma.vmem_to_hbm [thread:$0]  %s254_s7, 256, %s507_s3, [#allocation3], %s431_s15, %s431_s15, %s432_s16  }
 0x17e   :  { %413 = dma.done.wait [#allocation3], 256  }
 0x17f   :  { %414 = vsyncadd [#allocation3], 4294967040 }
 0x180   :  { %263 = vsyncpa [#allocation3], 1 }

</bundles_post_ra>
